<compile_context>
chip_gen: v5e
topology: v5e:2x2
jax: 0.10.0
libtpu: 0.0.40
codegen_flags: <defaults>
</compile_context>

<pallas_src>
import jax
import jax.numpy as jnp
from jax.experimental import pallas as pl
from jax.experimental.pallas import tpu as pltpu

_LANE = 128


def _round_up(x, m):
    return (x + m - 1) // m * m


# ---------------------------------------------------------------------------
# Kernels
# ---------------------------------------------------------------------------
def _f1_partial_binary_kernel(y0_ref, y1_ref, yt_ref, out_ref):
    """C == 2 fast path. All refs are lane-dense (TR, 128) tiles."""
    # argmax over 2 classes == single compare (ties -> class 0, like torch.max)
    pred = (y1_ref[...] > y0_ref[...]).astype(jnp.float32)      # (TR, 128)
    yt = yt_ref[...].astype(jnp.float32)                        # (TR, 128)

    # Confusion-count masks, mirroring the PyTorch expressions.
    # round(pred) dropped: pred is exactly 0.0/1.0.
    tp_m = jnp.round(pred * yt)
    fp_m = ((pred - yt) == 1.0).astype(jnp.float32)
    fn_m = ((pred - jnp.round(yt)) == 1.0).astype(jnp.float32)

    # Per-block, per-lane partial sums (lane-dense stores); the cross-lane /
    # cross-block reduction + the scalar F1 math happen in the JAX wrapper.
    out_ref[0, 0:1, :] = jnp.sum(tp_m, axis=0, keepdims=True)
    out_ref[0, 1:2, :] = jnp.sum(fp_m, axis=0, keepdims=True)
    out_ref[0, 2:3, :] = jnp.sum(fn_m, axis=0, keepdims=True)


def _f1_partial_generic_kernel(y_ref, yt_ref, out_ref):
    """Generic C path (tiled over rows; classes on the lane axis)."""
    yv = y_ref[...]                                             # (TM, C)
    yt = yt_ref[...].astype(jnp.float32)                        # (TM, 1)
    num_classes = yv.shape[1]

    # argmax along classes (first index on ties, like torch.max(dim=1)).
    max_v = jnp.max(yv, axis=1, keepdims=True)
    col = jax.lax.broadcasted_iota(jnp.int32, yv.shape, 1)
    idx = jnp.min(jnp.where(yv == max_v, col, jnp.int32(num_classes)),
                  axis=1, keepdims=True)
    y_pred = idx.astype(jnp.float32)                            # (TM, 1)

    tp = jnp.sum(jnp.round(y_pred * yt))
    fp = jnp.sum(((y_pred - yt) == 1.0).astype(jnp.float32))
    fn = jnp.sum(((y_pred - jnp.round(yt)) == 1.0).astype(jnp.float32))

    # Place the three scalars at lane 0 of a (3, 128) block.
    row = jax.lax.broadcasted_iota(jnp.int32, (3, _LANE), 0)
    lane = jax.lax.broadcasted_iota(jnp.int32, (3, _LANE), 1)
    lane0 = lane == 0
    out_ref[0, :, :] = (tp * ((row == 0) & lane0).astype(jnp.float32)
                        + fp * ((row == 1) & lane0).astype(jnp.float32)
                        + fn * ((row == 2) & lane0).astype(jnp.float32))


# ---------------------------------------------------------------------------
# Wrappers
# ---------------------------------------------------------------------------
def _f1_partials_binary(y, y_true, block_rows):
    n = y.shape[0]
    rows = pl.cdiv(n, _LANE)
    tr = min(_round_up(block_rows, 8), _round_up(rows, 8))
    grid = pl.cdiv(rows, tr)
    n_pad = grid * tr * _LANE

    y0 = y[:, 0]
    y1 = y[:, 1]
    yt = y_true
    pad = n_pad - n
    if pad:
        y0 = jnp.pad(y0, (0, pad))           # padded rows: pred=0, label=0
        y1 = jnp.pad(y1, (0, pad))           # -> contribute nothing
        yt = jnp.pad(yt, (0, pad))
    y0 = y0.reshape(grid * tr, _LANE)
    y1 = y1.reshape(grid * tr, _LANE)
    yt = yt.reshape(grid * tr, _LANE)

    return pl.pallas_call(
        _f1_partial_binary_kernel,
        out_shape=jax.ShapeDtypeStruct((grid, 3, _LANE), jnp.float32),
        grid=(grid,),
        in_specs=[
            pl.BlockSpec((tr, _LANE), lambda i: (i, 0)),
            pl.BlockSpec((tr, _LANE), lambda i: (i, 0)),
            pl.BlockSpec((tr, _LANE), lambda i: (i, 0)),
        ],
        out_specs=pl.BlockSpec((1, 3, _LANE), lambda i: (i, 0, 0)),
        compiler_params=pltpu.CompilerParams(
            dimension_semantics=("parallel",)),
    )(y0, y1, yt)


def _f1_partials_generic(y, y_true, block_rows):
    n, c = y.shape
    tm = min(_round_up(block_rows, 8), _round_up(n, 8))
    grid = pl.cdiv(n, tm)
    n_pad = grid * tm

    yt = y_true
    pad = n_pad - n
    if pad:
        y = jnp.pad(y, ((0, pad), (0, 0)))   # all-equal logits -> argmax 0
        yt = jnp.pad(yt, (0, pad))           # label 0 -> contributes nothing
    yt = yt.reshape(n_pad, 1)

    return pl.pallas_call(
        _f1_partial_generic_kernel,
        out_shape=jax.ShapeDtypeStruct((grid, 3, _LANE), jnp.float32),
        grid=(grid,),
        in_specs=[
            pl.BlockSpec((tm, c), lambda i: (i, 0)),
            pl.BlockSpec((tm, 1), lambda i: (i, 0)),
        ],
        out_specs=pl.BlockSpec((1, 3, _LANE), lambda i: (i, 0, 0)),
        compiler_params=pltpu.CompilerParams(
            dimension_semantics=("parallel",)),
    )(y, yt)


def _finalize(parts):
    """parts: (G, 3, 128) per-block partial counts -> scalar F1 loss."""
    sums = jnp.sum(parts, axis=(0, 2))       # (3,) = [tp, fp, fn]
    tp, fp, fn = sums[0], sums[1], sums[2]
    eps = jnp.float32(1e-07)
    precision = tp / (tp + fp + eps)
    recall = tp / (tp + fn + eps)
    f1 = 2.0 * precision * recall / (precision + recall + eps)
    return jnp.float32(1.0) - f1


def f1_loss(y, y_true, *, block_rows=512):
    """y: (N, C) logits; y_true: (N,) labels. Returns scalar f32 loss.

    NOTE: like the PyTorch source, the tp/fp/fn formulas are only meaningful
    for binary (C == 2) classification; the C != 2 path just mirrors them.
    """
    y_true = jnp.ravel(y_true)
    if jnp.issubdtype(y_true.dtype, jnp.bool_):
        y_true = y_true.astype(jnp.float32)

    if y.shape[1] == 2:
        parts = _f1_partials_binary(y, y_true, block_rows)
    else:
        parts = _f1_partials_generic(y, y_true, block_rows)
    return _finalize(parts)


def f1_loss_ref(y, y_true):
    """Pure-JAX reference mirroring the PyTorch forward."""
    eps = 1e-07
    y_pred = jnp.argmax(y, axis=1).astype(jnp.float32)
    y_true = jnp.ravel(y_true).astype(jnp.float32)
    tp = jnp.sum(jnp.round(y_pred * y_true))
    fp = jnp.sum(((jnp.round(y_pred) - y_true) == 1.0).astype(jnp.float32))
    fn = jnp.sum(((y_pred - jnp.round(y_true)) == 1.0).astype(jnp.float32))
    precision = tp / (tp + fp + eps)
    recall = tp / (tp + fn + eps)
    f1 = 2 * precision * recall / (precision + recall + eps)
    return 1.0 - f1


if __name__ == "__main__":
    key = jax.random.PRNGKey(0)
    k1, k2, k3, k4 = jax.random.split(key, 4)

    # --- Binary path, batch not a multiple of 128 (exercises padding) ------
    N, C = 1000, 2
    y = jax.random.normal(k1, (N, C), dtype=jnp.float32)
    y_true = jax.random.bernoulli(k2, 0.5, (N,)).astype(jnp.float32)
    loss = jax.block_until_ready(f1_loss(y, y_true, block_rows=8))
    ref = f1_loss_ref(y, y_true)
    assert jnp.allclose(loss, ref, atol=1e-5), (loss, ref)

    # --- Binary path, bf16 logits, multi-block "parallel" grid -------------
    N2 = 4096
    y_bf = jax.random.normal(k3, (N2, 2), dtype=jnp.float32).astype(jnp.bfloat16)
    y_true2 = jax.random.bernoulli(k4, 0.5, (N2,)).astype(jnp.float32)
    loss2 = jax.block_until_ready(f1_loss(y_bf, y_true2, block_rows=8))
    ref2 = f1_loss_ref(y_bf.astype(jnp.float32), y_true2)
    assert jnp.allclose(loss2, ref2, atol=1e-5), (loss2, ref2)

    # --- Generic (C > 2) path ----------------------------------------------
    N3, C3 = 100, 5
    y3 = jax.random.normal(k1, (N3, C3), dtype=jnp.float32)
    y3_true = jax.random.bernoulli(k2, 0.5, (N3,)).astype(jnp.float32)
    loss3 = jax.block_until_ready(f1_loss(y3, y3_true, block_rows=8))
    ref3 = f1_loss_ref(y3, y3_true)
    assert jnp.allclose(loss3, ref3, atol=1e-5), (loss3, ref3)

    print("KERNEL_OK")
</pallas_src>

<mosaic_0001>
module attributes {stable_mosaic.version = 11 : i64} {
  func.func @_f1_partial_binary_kernel(%arg0: i32, %arg1: memref<8x128xf32, #tpu.memory_space<vmem>>, %arg2: memref<8x128xf32, #tpu.memory_space<vmem>>, %arg3: memref<8x128xf32, #tpu.memory_space<vmem>>, %arg4: memref<1x3x128xf32, #tpu.memory_space<vmem>>) attributes {dimension_semantics = [#tpu.dimension_semantics<parallel>], iteration_bounds = array<i64: 1>, scalar_prefetch = 0 : i64, scratch_operands = 0 : i64, tpu.core_type = #tpu.core_type<tc>, window_params = [{transform_indices = @transform_0, window_bounds = array<i64: 8, 128>}, {transform_indices = @transform_1, window_bounds = array<i64: 8, 128>}, {transform_indices = @transform_2, window_bounds = array<i64: 8, 128>}, {transform_indices = @transform_3, window_bounds = array<i64: 1, 3, 128>}]} {
    %c0 = arith.constant 0 : index
    %c0_0 = arith.constant 0 : index
    %0 = vector.load %arg2[%c0, %c0_0] : memref<8x128xf32, #tpu.memory_space<vmem>>, vector<8x128xf32>
    %c0_1 = arith.constant 0 : index
    %c0_2 = arith.constant 0 : index
    %1 = vector.load %arg1[%c0_1, %c0_2] : memref<8x128xf32, #tpu.memory_space<vmem>>, vector<8x128xf32>
    %2 = arith.cmpf ogt, %0, %1 : vector<8x128xf32>
    %3 = arith.extui %2 : vector<8x128xi1> to vector<8x128xi32>
    %4 = arith.sitofp %3 : vector<8x128xi32> to vector<8x128xf32>
    %c0_3 = arith.constant 0 : index
    %c0_4 = arith.constant 0 : index
    %5 = vector.load %arg3[%c0_3, %c0_4] : memref<8x128xf32, #tpu.memory_space<vmem>>, vector<8x128xf32>
    %6 = arith.mulf %4, %5 : vector<8x128xf32>
    %7 = math.roundeven %6 : vector<8x128xf32>
    %8 = arith.subf %4, %5 : vector<8x128xf32>
    %cst = arith.constant 1.000000e+00 : f32
    %9 = vector.broadcast %cst : f32 to vector<8x128xf32>
    %10 = arith.cmpf oeq, %8, %9 : vector<8x128xf32>
    %11 = arith.extui %10 : vector<8x128xi1> to vector<8x128xi32>
    %12 = arith.sitofp %11 : vector<8x128xi32> to vector<8x128xf32>
    %13 = math.roundeven %5 : vector<8x128xf32>
    %14 = arith.subf %4, %13 : vector<8x128xf32>
    %cst_5 = arith.constant 1.000000e+00 : f32
    %15 = vector.broadcast %cst_5 : f32 to vector<8x128xf32>
    %16 = arith.cmpf oeq, %14, %15 : vector<8x128xf32>
    %17 = arith.extui %16 : vector<8x128xi1> to vector<8x128xi32>
    %18 = arith.sitofp %17 : vector<8x128xi32> to vector<8x128xf32>
    %cst_6 = arith.constant dense<0.000000e+00> : vector<128xf32>
    %19 = vector.multi_reduction <add>, %7, %cst_6 [0] : vector<8x128xf32> to vector<128xf32>
    %20 = vector.shape_cast %19 : vector<128xf32> to vector<1x128xf32>
    %c0_7 = arith.constant 0 : index
    %c0_8 = arith.constant 0 : index
    %c0_9 = arith.constant 0 : index
    %21 = vector.load %arg4[%c0_7, %c0_8, %c0_9] : memref<1x3x128xf32, #tpu.memory_space<vmem>>, vector<1x1x128xf32>
    %22 = vector.shape_cast %21 : vector<1x1x128xf32> to vector<1x128xf32>
    %23 = vector.shape_cast %20 : vector<1x128xf32> to vector<1x1x128xf32>
    tpu.vector_store %arg4[%c0_7, %c0_8, %c0_9], %23 {strides = array<i32>} : memref<1x3x128xf32, #tpu.memory_space<vmem>>, vector<1x1x128xf32>,
    %cst_10 = arith.constant dense<0.000000e+00> : vector<128xf32>
    %24 = vector.multi_reduction <add>, %12, %cst_10 [0] : vector<8x128xf32> to vector<128xf32>
    %25 = vector.shape_cast %24 : vector<128xf32> to vector<1x128xf32>
    %c0_11 = arith.constant 0 : index
    %c1 = arith.constant 1 : index
    %c0_12 = arith.constant 0 : index
    %26 = vector.load %arg4[%c0_11, %c1, %c0_12] : memref<1x3x128xf32, #tpu.memory_space<vmem>>, vector<1x1x128xf32>
    %27 = vector.shape_cast %26 : vector<1x1x128xf32> to vector<1x128xf32>
    %28 = vector.shape_cast %25 : vector<1x128xf32> to vector<1x1x128xf32>
    tpu.vector_store %arg4[%c0_11, %c1, %c0_12], %28 {strides = array<i32>} : memref<1x3x128xf32, #tpu.memory_space<vmem>>, vector<1x1x128xf32>,
    %cst_13 = arith.constant dense<0.000000e+00> : vector<128xf32>
    %29 = vector.multi_reduction <add>, %18, %cst_13 [0] : vector<8x128xf32> to vector<128xf32>
    %30 = vector.shape_cast %29 : vector<128xf32> to vector<1x128xf32>
    %c0_14 = arith.constant 0 : index
    %c2 = arith.constant 2 : index
    %c0_15 = arith.constant 0 : index
    %31 = vector.load %arg4[%c0_14, %c2, %c0_15] : memref<1x3x128xf32, #tpu.memory_space<vmem>>, vector<1x1x128xf32>
    %32 = vector.shape_cast %31 : vector<1x1x128xf32> to vector<1x128xf32>
    %33 = vector.shape_cast %30 : vector<1x128xf32> to vector<1x1x128xf32>
    tpu.vector_store %arg4[%c0_14, %c2, %c0_15], %33 {strides = array<i32>} : memref<1x3x128xf32, #tpu.memory_space<vmem>>, vector<1x1x128xf32>,
    return
  }
  func.func @transform_0(%arg0: i32) -> (i32, i32) {
    %c0_i32 = arith.constant 0 : i32
    %c0_i32_0 = arith.constant 0 : i32
    return %arg0, %c0_i32 : i32, i32
  }
  func.func @transform_1(%arg0: i32) -> (i32, i32) {
    %c0_i32 = arith.constant 0 : i32
    %c0_i32_0 = arith.constant 0 : i32
    return %arg0, %c0_i32 : i32, i32
  }
  func.func @transform_2(%arg0: i32) -> (i32, i32) {
    %c0_i32 = arith.constant 0 : i32
    %c0_i32_0 = arith.constant 0 : i32
    return %arg0, %c0_i32 : i32, i32
  }
  func.func @transform_3(%arg0: i32) -> (i32, i32, i32) {
    %c0_i32 = arith.constant 0 : i32
    %c0_i32_0 = arith.constant 0 : i32
    %c0_i32_1 = arith.constant 0 : i32
    return %arg0, %c0_i32, %c0_i32_0 : i32, i32, i32
  }
}

</mosaic_0001>

<bundles_post_ra>
// kernel: tpu_custom_call.1
= control target key start
LH: loop header
LB: loop body
LE: loop exit
PB: predicated region body
PF: predicated region fallthrough
CT: control target
= control target key end

     0   :  { %8 = vsyncpa [#allocation3], 0  ;;  %s240_s0 = inlined_call_operand.hbm [shape: f32[8,128], index: 0, kind: input, shape index: {}]   ;;  %s241_s1 = inlined_call_operand.hbm [shape: f32[8,128], index: 1, kind: input, shape index: {}]   ;;  %s242_s2 = inlined_call_operand.hbm [shape: f32[8,128], index: 2, kind: input, shape index: {}]   ;;  %s243_s3 = inlined_call_operand.vmem [shape: f32[1,3,128], index: 3, kind: output, shape index: {}]  }
   0x1   :  { %9 = vsyncpa [#allocation5], 0  ;;  %s26_s14 = sshll.u32 %s241_s1, 4  ;;  %s198_s15 = smov [#allocation4]   ;;  %s27_s14 = int_to_ptr.hbm [resolvable:$true] %s26_s14 }
   0x2   :  { %s28_s16 = sshll.u32 %s198_s15, 4  ;;  %s15_s19 = sshll.u32 %s240_s0, 4  ;;  %s29_s16 = int_to_ptr.vmem [resolvable:$true] %s28_s16  ;;  %s16_s19 = int_to_ptr.hbm [resolvable:$true] %s15_s19 }
   0x3   :  { %31 = dma.hbm_to_vmem [thread:$0]  %s27_s14, 128, %s29_s16, [#allocation5]  }
   0x4   :  { %s199_s20 = smov [#allocation2]   ;;  %s37_s24 = sshll.u32 %s242_s2, 4  ;;  %s38_s24 = int_to_ptr.hbm [resolvable:$true] %s37_s24 }
   0x5   :  { %s17_s21 = sshll.u32 %s199_s20, 4  ;;  %s200_s1 = smov [#allocation6]   ;;  %s18_s21 = int_to_ptr.vmem [resolvable:$true] %s17_s21 }
   0x6   :  { %20 = dma.hbm_to_vmem [thread:$0]  %s16_s19, 128, %s18_s21, [#allocation3]  }
   0x7   :  { %s39_s25 = sshll.u32 %s200_s1, 4  ;;  %s40_s25 = int_to_ptr.vmem [resolvable:$true] %s39_s25 }
   0x8   :  { %42 = dma.hbm_to_vmem [thread:$0]  %s38_s24, 128, %s40_s25, [#allocation5]  }
   0x9   :  { %194 = dma.done.wait [#allocation3], 128  }
   0xa   :  { %195 = vsyncadd [#allocation3], 4294967168 }
   0xb   :  { %196 = dma.done.wait [#allocation5], 256  }
   0xc   :  { %197 = vsyncadd [#allocation5], 4294967040  ;;  %v55_v0 = vld [vmem:[#allocation4] sm:$0xff]  ;;  %v56_v1 = vld [vmem:[#allocation2] sm:$0xff]  ;;  %v201_v4 = vmov 0.0  }
   0xd   :  { %v60_v2 = vld [vmem:[#allocation6] sm:$0xff]  ;;  %vm57_vm0 = vcmp.gt.f32.partialorder %v55_v0, %v56_v1 }
   0xe   :  { %v112_v3 = vcvt.f32.s32 %v60_v2  ;;  %v99_v5 = vsel %vm57_vm0, 1.0, %v201_v4  ;;  %v110_v8 = vand.u32 2147483647, %v60_v2  ;;  %v115_v10 = vand.u32 2147483648, %v60_v2 }
   0xf   :  { %v61_v6 = vmul.f32 %v99_v5, %v60_v2  ;;  %v63_v7 = vsub.f32 %v99_v5, %v60_v2 }
  0x10   :  { %v113_v9 = vcvt.s32.f32 %v112_v3  ;;  %vm111_vm2 = vcmp.lt.f32.partialorder %v110_v8, 8388608.0 }
  0x11   :  { %v104_v11 = vcvt.f32.s32 %v61_v6  ;;  %vm64_vm1 = vcmp.eq.f32.partialorder %v63_v7, 1.0  ;;  %v102_v12 = vand.u32 2147483647, %v61_v6  ;;  %v107_v16 = vand.u32 2147483648, %v61_v6 }
  0x12   :  { %v100_v13 = vsel %vm64_vm1, 1.0, %v201_v4  ;;  %v114_v14 = vand.u32 2147483647, %v113_v9 }
  0x13   :  { %v105_v15 = vcvt.s32.f32 %v104_v11  ;;  %v79_v17 = vrot.slane %v100_v13, 4  ;;  %vm103_vm3 = vcmp.lt.f32.partialorder %v102_v12, 8388608.0 }
  0x14   :  { %v116_v18 = vor.u32 %v115_v10, %v114_v14 }
  0x15   :  { %v106_v19 = vand.u32 2147483647, %v105_v15  ;;  %v80_v20 = vadd.f32 %v100_v13, %v79_v17 }
  0x16   :  { %v117_v21 = vsel %vm111_vm2, %v116_v18, %v60_v2 }
  0x17   :  { %v108_v22 = vor.u32 %v107_v16, %v106_v19  ;;  %v81_v23 = vrot.slane %v80_v20, 2  ;;  %v68_v24 = vsub.f32 %v99_v5, %v117_v21 }
  0x19   :  { %v109_v25 = vsel %vm103_vm3, %v108_v22, %v61_v6  ;;  %v82_v26 = vadd.f32 %v81_v23, %v80_v20  ;;  %vm69_vm4 = vcmp.eq.f32.partialorder %v68_v24, 1.0 }
  0x1a   :  { %v72_v27 = vrot.slane %v109_v25, 4  ;;  %v101_v28 = vsel %vm69_vm4, 1.0, %v201_v4 }
  0x1b   :  { %v83_v29 = vrot.slane %v82_v26, 1  ;;  %v86_v30 = vrot.slane %v101_v28, 4 }
  0x1c   :  { %v73_v31 = vadd.f32 %v109_v25, %v72_v27 }
  0x1d   :  { %v84_v32 = vadd.f32 %v83_v29, %v82_v26  ;;  %v87_v33 = vadd.f32 %v101_v28, %v86_v30 }
  0x1e   :  { %v74_v34 = vrot.slane %v73_v31, 2 }
  0x1f   :  { %85 = vst [vmem:[%s243_s3 + $0x1] sm:$0x1] %v84_v32  ;;  %v88_v35 = vrot.slane %v87_v33, 2 }
  0x20   :  { %v75_v36 = vadd.f32 %v74_v34, %v73_v31 }
  0x21   :  { %v89_v37 = vadd.f32 %v88_v35, %v87_v33 }
  0x22   :  { %v76_v38 = vrot.slane %v75_v36, 1 }
  0x23   :  { %v90_v39 = vrot.slane %v89_v37, 1 }
  0x24   :  { %v77_v40 = vadd.f32 %v76_v38, %v75_v36 }
  0x25   :  { %v91_v41 = vadd.f32 %v90_v39, %v89_v37 }
  0x26   :  { %78 = vst [vmem:[%s243_s3] sm:$0x1] %v77_v40 }
  0x27   :  { %92 = vst [vmem:[%s243_s3 + $0x2] sm:$0x1] %v91_v41 }
  0x28   :  { %97 = vsyncpa [#allocation3], 1 }
  0x29   :  { %98 = vsyncpa [#allocation5], 1 }

</bundles_post_ra>
